<compile_context>
chip_gen: v6e
topology: v6e:2x2x1
jax: 0.10.0
libtpu: 0.0.40
codegen_flags: <defaults>
</compile_context>

<pallas_src>
import jax
import jax.numpy as jnp
from jax.experimental import pallas as pl
from jax.experimental.pallas import tpu as pltpu

LANE = 128                      # TPU lane width (last dim)
SUBLANE = 8                     # f32 sublane width (second-to-last dim)
VMEM_BUDGET = 48 * 1024 * 1024  # conservative vs v7x's 64 MiB per-TC VMEM
SMALL_B = 64                    # below this a single no-grid call is latency-optimal


def _round_up(n, m):
    return ((n + m - 1) // m) * m


def _make_mlp_kernel(compute_dtype, l1_on_vpu, n_features):
    """Fused relu(x @ W1 + b1) @ W2 + b2 with f32 accumulation/bias/relu."""

    def mlp_kernel(x_ref, w1_ref, b1_ref, w2_ref, b2_ref, o_ref):
        if l1_on_vpu:
            # Tiny contraction (F < 8): F unrolled VPU broadcast-FMAs instead
            # of paying MXU push/pop + result-FIFO latency for a matmul that
            # uses <2% of the array.
            xf = x_ref[...].astype(jnp.float32)
            w1 = w1_ref[...].astype(jnp.float32)
            h = xf[:, 0:1] * w1[0:1, :]
            for k in range(1, n_features):
                h = h + xf[:, k:k + 1] * w1[k:k + 1, :]
        else:
            # Cast x to the MXU operand dtype *inside* the kernel (VPU cast,
            # hidden under DMA) instead of an extra HBM pass in the wrapper.
            h = jnp.dot(x_ref[...].astype(compute_dtype), w1_ref[...],
                        preferred_element_type=jnp.float32)
        h = jnp.maximum(h + b1_ref[...].astype(jnp.float32), 0.0)   # bias+relu in f32 (VPU)
        # Cast activation to the weight dtype so a bf16 W2 keeps the second
        # matmul on the fast MXU path (no-op when everything is f32).
        y = jnp.dot(h.astype(w2_ref.dtype), w2_ref[...],
                    preferred_element_type=jnp.float32)
        o_ref[...] = (y + b2_ref[...].astype(jnp.float32)).astype(o_ref.dtype)

    return mlp_kernel


def _footprint_bytes(n_rows, F, H, o_dim, x_item, w_item, out_item, buffered):
    """Approximate VMEM footprint for one kernel step."""
    x_tile = n_rows * F * x_item
    out_tile = n_rows * o_dim * out_item
    weights = (F * H + H * o_dim) * w_item + (H + o_dim) * 4   # W1, W2, b1, b2
    scratch = n_rows * (H + o_dim) * 4                          # f32 h / y intermediates
    bufs = (2 if buffered else 1) * (x_tile + out_tile)         # double-buffered tiles
    return bufs + weights + scratch


def net_forward(x, w1, b1, w2, b2, *, tile_b=4096, use_bf16=False, out_dtype=None):
    """Fused two-layer MLP forward pass on TPU via a single Pallas kernel."""
    B, F = x.shape
    H = w1.shape[1]
    n_out = w2.shape[1]
    out_dtype = jnp.dtype(out_dtype) if out_dtype is not None else jnp.dtype(x.dtype)

    # Lane-dense output only when the padding amplification is small.  For tiny
    # n_out (e.g. 4 -> 128) the padded writeback + wrapper slice would cost far
    # more HBM traffic than the masked partial store it avoids.
    o_pad = _round_up(n_out, LANE)
    pad_out = (o_pad != n_out) and (n_out >= 64 or o_pad * 2 <= n_out * 3)
    o_dim = o_pad if pad_out else n_out
    if pad_out:
        w2p = jnp.pad(w2, ((0, 0), (0, o_dim - n_out)))
        b2p = jnp.pad(b2, ((0, 0), (0, o_dim - n_out)))
    else:
        w2p, b2p = w2, b2

    # Layer-1-on-VPU only for the tiny, latency-bound path (neutral elsewhere).
    l1_on_vpu = (F < SUBLANE) and (B <= SMALL_B)

    w_dtype = jnp.bfloat16 if use_bf16 else jnp.float32
    compute_dtype = jnp.bfloat16 if use_bf16 else jnp.float32
    # Only the tiny, amortized weights are cast in the wrapper; x stays in its
    # HBM dtype and is cast inside the kernel.
    w1_in = w1.astype(w_dtype) if (use_bf16 and not l1_on_vpu) else w1
    w2_in = w2p.astype(w_dtype) if use_bf16 else w2p

    x_item = jnp.dtype(x.dtype).itemsize
    w_item = jnp.dtype(w_dtype).itemsize
    out_item = out_dtype.itemsize
    # Row alignment for the second-to-last dim: 8 for 32-bit, 16 for bf16 output.
    row_align = max(SUBLANE, SUBLANE * (4 // out_item))

    kernel = _make_mlp_kernel(compute_dtype, l1_on_vpu, F)
    out_shape = jax.ShapeDtypeStruct((B, o_dim), out_dtype)

    nogrid_bytes = _footprint_bytes(B, F, H, o_dim, x_item, w_item, out_item,
                                    buffered=False)

    if B <= SMALL_B and nogrid_bytes <= VMEM_BUDGET:
        # Tiny batch: no grid at all (a 1-step grid still costs ~600 cycles of
        # bookkeeping).  Every operand is one whole-array VMEM block.  VMEM
        # limit sized from the real footprint so v5e's 16 MiB default scoped
        # limit never bites.
        vmem = pl.BlockSpec(memory_space=pltpu.MemorySpace.VMEM)
        out = pl.pallas_call(
            kernel,
            out_shape=out_shape,
            in_specs=[vmem] * 5,
            out_specs=vmem,
            compiler_params=pltpu.CompilerParams(
                vmem_limit_bytes=int(nogrid_bytes * 1.25) + (2 << 20)),
        )(x, w1_in, b1, w2_in, b2p)
    else:
        # Row-tiled grid: tiles big enough that the ~0.35us/step pipeline
        # bookkeeping is amortized, but always >= 2 steps so v7x's two
        # TensorCores each get half the rows via the "parallel" batch axis.
        tile = _round_up(min(tile_b, max(pl.cdiv(B, 2), SUBLANE)), row_align)
        foot = _footprint_bytes(tile, F, H, o_dim, x_item, w_item, out_item, True)
        while foot > VMEM_BUDGET and tile > row_align:
            tile = _round_up(max(tile // 2, row_align), row_align)
            foot = _footprint_bytes(tile, F, H, o_dim, x_item, w_item, out_item, True)
        if foot > VMEM_BUDGET:
            # Weights alone no longer fit VMEM-resident; this config would need
            # a contraction-tiled variant (grid over H, f32 accumulator scratch
            # with pl.when init/finalize) rather than silently spilling.
            raise ValueError(
                "n_hidden/n_output too large for VMEM-resident weights "
                f"(need {foot} bytes, budget {VMEM_BUDGET}).")

        grid = (pl.cdiv(B, tile),)
        # NOTE: when B % tile != 0 the last step reads out-of-range x rows and
        # Pallas masks the out-of-range output rows; this is safe here only
        # because the computation is strictly row-independent.
        out = pl.pallas_call(
            kernel,
            out_shape=out_shape,
            grid=grid,
            in_specs=[
                pl.BlockSpec((tile, F), lambda i: (i, 0)),
                pl.BlockSpec((F, H), lambda i: (0, 0)),
                pl.BlockSpec((1, H), lambda i: (0, 0)),
                pl.BlockSpec((H, o_dim), lambda i: (0, 0)),
                pl.BlockSpec((1, o_dim), lambda i: (0, 0)),
            ],
            out_specs=pl.BlockSpec((tile, o_dim), lambda i: (i, 0)),
            compiler_params=pltpu.CompilerParams(
                dimension_semantics=("parallel",),
                vmem_limit_bytes=int(foot * 1.25) + (2 << 20)),
        )(x, w1_in, b1, w2_in, b2p)

    # Strip lane padding outside the kernel (only taken when pad_out is True,
    # i.e. when the amplification was small).
    return out[:, :n_out] if pad_out else out


def init_params(key, n_features, n_hidden, n_output):
    """Deterministic parameter init (PyTorch-like uniform fan-in bounds)."""
    k1, k2, k3, k4 = jax.random.split(key, 4)
    bound1 = 1.0 / jnp.sqrt(n_features)
    bound2 = 1.0 / jnp.sqrt(n_hidden)
    w1 = jax.random.uniform(k1, (n_features, n_hidden), jnp.float32, -bound1, bound1)
    b1 = jax.random.uniform(k2, (1, n_hidden), jnp.float32, -bound1, bound1)
    w2 = jax.random.uniform(k3, (n_hidden, n_output), jnp.float32, -bound2, bound2)
    b2 = jax.random.uniform(k4, (1, n_output), jnp.float32, -bound2, bound2)
    return w1, b1, w2, b2


if __name__ == "__main__":
    # Small shapes consistent with the module's forward:
    #   x: (batch, n_features) -> hidden (n_hidden) -> output (n_output)
    batch, n_features, n_hidden, n_output = 8, 4, 32, 4

    key = jax.random.PRNGKey(0)
    kx, kp, kx2 = jax.random.split(key, 3)
    x = jax.random.normal(kx, (batch, n_features), dtype=jnp.float32)
    w1, b1, w2, b2 = init_params(kp, n_features, n_hidden, n_output)

    def ref_fn(xx):
        return jnp.maximum(xx @ w1 + b1, 0.0) @ w2 + b2

    # 1) Tiny batch -> no-grid, whole-array-in-VMEM, VPU layer-1 (F < 8) path.
    out = jax.block_until_ready(net_forward(x, w1, b1, w2, b2))
    assert out.shape == (batch, n_output)
    assert jnp.allclose(out, ref_fn(x), atol=1e-5, rtol=1e-5)

    # 2) Larger batch -> row-tiled grid (>= 2 steps, parallel batch axis).
    big_b = 96
    xb = jax.random.normal(kx2, (big_b, n_features), dtype=jnp.float32)
    out_b = jax.block_until_ready(net_forward(xb, w1, b1, w2, b2))
    assert out_b.shape == (big_b, n_output)
    assert jnp.allclose(out_b, ref_fn(xb), atol=1e-5, rtol=1e-5)

    # 3) bf16 MXU operands + bf16 output (f32 accumulation) -> loose tolerance.
    out_bf = jax.block_until_ready(
        net_forward(xb, w1, b1, w2, b2, use_bf16=True, out_dtype=jnp.bfloat16))
    assert out_bf.shape == (big_b, n_output)
    assert out_bf.dtype == jnp.bfloat16
    assert jnp.allclose(out_bf.astype(jnp.float32), ref_fn(xb), atol=1e-1, rtol=1e-1)

    print("KERNEL_OK")
</pallas_src>

<mosaic_0001>
module attributes {stable_mosaic.version = 11 : i64} {
  func.func @mlp_kernel(%arg0: memref<8x4xf32, #tpu.memory_space<vmem>>, %arg1: memref<4x32xf32, #tpu.memory_space<vmem>>, %arg2: memref<1x32xf32, #tpu.memory_space<vmem>>, %arg3: memref<32x4xf32, #tpu.memory_space<vmem>>, %arg4: memref<1x4xf32, #tpu.memory_space<vmem>>, %arg5: memref<8x4xf32, #tpu.memory_space<vmem>>) attributes {dimension_semantics = [], scalar_prefetch = 0 : i64, scratch_operands = 0 : i64, tpu.core_type = #tpu.core_type<tc>} {
    %c0 = arith.constant 0 : index
    %c0_0 = arith.constant 0 : index
    %0 = vector.load %arg0[%c0, %c0_0] : memref<8x4xf32, #tpu.memory_space<vmem>>, vector<8x4xf32>
    %c0_1 = arith.constant 0 : index
    %c0_2 = arith.constant 0 : index
    %1 = vector.load %arg1[%c0_1, %c0_2] : memref<4x32xf32, #tpu.memory_space<vmem>>, vector<4x32xf32>
    %2 = vector.extract_strided_slice %0 {offsets = [0, 0], sizes = [8, 1], strides = [1, 1]} : vector<8x4xf32> to vector<8x1xf32>
    %3 = vector.extract_strided_slice %1 {offsets = [0, 0], sizes = [1, 32], strides = [1, 1]} : vector<4x32xf32> to vector<1x32xf32>
    %4 = vector.broadcast %2 : vector<8x1xf32> to vector<8x32xf32>
    %5 = vector.broadcast %3 : vector<1x32xf32> to vector<8x32xf32>
    %6 = arith.mulf %4, %5 : vector<8x32xf32>
    %7 = vector.extract_strided_slice %0 {offsets = [0, 1], sizes = [8, 1], strides = [1, 1]} : vector<8x4xf32> to vector<8x1xf32>
    %8 = vector.extract_strided_slice %1 {offsets = [1, 0], sizes = [1, 32], strides = [1, 1]} : vector<4x32xf32> to vector<1x32xf32>
    %9 = vector.broadcast %7 : vector<8x1xf32> to vector<8x32xf32>
    %10 = vector.broadcast %8 : vector<1x32xf32> to vector<8x32xf32>
    %11 = arith.mulf %9, %10 : vector<8x32xf32>
    %12 = arith.addf %6, %11 : vector<8x32xf32>
    %13 = vector.extract_strided_slice %0 {offsets = [0, 2], sizes = [8, 1], strides = [1, 1]} : vector<8x4xf32> to vector<8x1xf32>
    %14 = vector.extract_strided_slice %1 {offsets = [2, 0], sizes = [1, 32], strides = [1, 1]} : vector<4x32xf32> to vector<1x32xf32>
    %15 = vector.broadcast %13 : vector<8x1xf32> to vector<8x32xf32>
    %16 = vector.broadcast %14 : vector<1x32xf32> to vector<8x32xf32>
    %17 = arith.mulf %15, %16 : vector<8x32xf32>
    %18 = arith.addf %12, %17 : vector<8x32xf32>
    %19 = vector.extract_strided_slice %0 {offsets = [0, 3], sizes = [8, 1], strides = [1, 1]} : vector<8x4xf32> to vector<8x1xf32>
    %20 = vector.extract_strided_slice %1 {offsets = [3, 0], sizes = [1, 32], strides = [1, 1]} : vector<4x32xf32> to vector<1x32xf32>
    %21 = vector.broadcast %19 : vector<8x1xf32> to vector<8x32xf32>
    %22 = vector.broadcast %20 : vector<1x32xf32> to vector<8x32xf32>
    %23 = arith.mulf %21, %22 : vector<8x32xf32>
    %24 = arith.addf %18, %23 : vector<8x32xf32>
    %c0_3 = arith.constant 0 : index
    %c0_4 = arith.constant 0 : index
    %25 = vector.load %arg2[%c0_3, %c0_4] : memref<1x32xf32, #tpu.memory_space<vmem>>, vector<1x32xf32>
    %26 = vector.broadcast %25 : vector<1x32xf32> to vector<8x32xf32>
    %27 = arith.addf %24, %26 : vector<8x32xf32>
    %cst = arith.constant 0.000000e+00 : f32
    %28 = vector.broadcast %cst : f32 to vector<8x32xf32>
    %29 = arith.maximumf %27, %28 : vector<8x32xf32>
    %c0_5 = arith.constant 0 : index
    %c0_6 = arith.constant 0 : index
    %30 = vector.load %arg3[%c0_5, %c0_6] : memref<32x4xf32, #tpu.memory_space<vmem>>, vector<32x4xf32>
    %cst_7 = arith.constant dense<0.000000e+00> : vector<8x4xf32>
    %31 = tpu.matmul %29, %30, %cst_7 {dimension_numbers = #tpu.dot_dimension_numbers<[1], [0], [0], [1], [0, 0, 1, 1], [], []>} : vector<8x32xf32>, vector<32x4xf32>, vector<8x4xf32> -> vector<8x4xf32>
    %c0_8 = arith.constant 0 : index
    %c0_9 = arith.constant 0 : index
    %32 = vector.load %arg4[%c0_8, %c0_9] : memref<1x4xf32, #tpu.memory_space<vmem>>, vector<1x4xf32>
    %33 = vector.broadcast %32 : vector<1x4xf32> to vector<8x4xf32>
    %34 = arith.addf %31, %33 : vector<8x4xf32>
    %c0_10 = arith.constant 0 : index
    %c0_11 = arith.constant 0 : index
    %35 = vector.load %arg5[%c0_10, %c0_11] : memref<8x4xf32, #tpu.memory_space<vmem>>, vector<8x4xf32>
    tpu.vector_store %arg5[%c0_10, %c0_11], %34 {strides = array<i32>} : memref<8x4xf32, #tpu.memory_space<vmem>>, vector<8x4xf32>,
    return
  }
}

</mosaic_0001>

<bundles_post_ra>
// kernel: tpu_custom_call.1
= control target key start
LH: loop header
LB: loop body
LE: loop exit
PB: predicated region body
PF: predicated region fallthrough
CT: control target
= control target key end

     0   :  { %v192_v0 = vmov 0   ;;  %v193_v2 = vmov 2   ;;  %v194_v3 = vmov 1   ;;  %v195_v4 = vmov 3   ;;  %s255_s0 = inlined_call_operand.vmem [shape: f32[8,4], index: 0, kind: input, shape index: {}]   ;;  %s256_s3 = inlined_call_operand.vmem [shape: f32[32,4], index: 3, kind: input, shape index: {}]   ;;  %s257_s1 = inlined_call_operand.vmem [shape: f32[4,32], index: 1, kind: input, shape index: {}]   ;;  %s258_s2 = inlined_call_operand.vmem [shape: f32[1,32], index: 2, kind: input, shape index: {}]   ;;  %s259_s4 = inlined_call_operand.vmem [shape: f32[1,4], index: 4, kind: input, shape index: {}]   ;;  %s260_s5 = inlined_call_operand.vmem [shape: f32[8,4], index: 5, kind: output, shape index: {}]  }
   0x1   :  { %187 = vset.pattern.permute.xlu0 %v192_v0  ;;  %v20_v1 = vld [vmem:[%s255_s0] sm:$0xff]  ;;  %189 = vset.pattern.permute.xlu1 %v193_v2  ;;  %v74_v5 = vld [vmem:[%s256_s3 + $0x18] sm:$0xff]  ;;  %v196_v6 = vmov 0.0   ;;  %v73_v7 = vld [vmem:[%s256_s3 + $0x10] sm:$0xff]  ;;  %vm197_vm0 = vmmov 0   ;;  %v27_v10 = vlaneseq  ;;  %vm82_vm1 = vcmask 261120  }
   0x2   :  { %24 = vperm.xlu0 %187, %v20_v1   ;;  %43 = vperm.xlu1 %189, %v20_v1   ;;  %v72_v8 = vld [vmem:[%s256_s3 + $0x8] sm:$0xff]  ;;  %v71_v9 = vld [vmem:[%s256_s3] sm:$0xff]  ;;  %vm156_vm2 = vcmask 31744  }
   0x3   :  { %170 = vmatprep.subr.mxu0 %v196_v6  ;;  %178 = vmatprep.mubr.msk.f32.mxu0 %vm197_vm0, %v196_v6  ;;  %v28_v11 = vshrl.u32 %v27_v10, 7  ;;  %v21_v14 = vld [vmem:[%s257_s1] sm:$0xf] }
   0x4   :  { %171 = vmatpush3.msra.mxu0 %v74_v5  ;;  %v162_v31 = vld [vmem:[%s258_s2] ss:$0 sm:$0xff] }
   0x5   :  { %172 = vmatprep.subr.mxu0 %v196_v6  ;;  %v29_v12 = vsub.s32 0, %v28_v11  ;;  %v38_v13 = vsub.s32 1, %v28_v11  ;;  %v48_v16 = vsub.s32 2, %v28_v11  ;;  %v58_v18 = vsub.s32 3, %v28_v11  ;;  %v163_v35 = vld [vmem:[%s259_s4] ss:$0 sm:$0xff] }
   0x6   :  { %188 = vset.pattern.permute.xlu0 %v194_v3  ;;  %190 = vset.pattern.permute.xlu1 %v195_v4 }
   0x7   :  { %33 = vperm.xlu0 %188, %v20_v1   ;;  %53 = vperm.xlu1 %190, %v20_v1   ;;  %v30_v19 = vrot.slane %v21_v14, %v29_v12  ;;  %v39_v20 = vrot.slane %v21_v14, %v38_v13  ;;  %v49_v21 = vrot.slane %v21_v14, %v48_v16 }
   0x8   :  { %173 = vmatpush3.msra.mxu0 %v73_v7  ;;  %v59_v22 = vrot.slane %v21_v14, %v58_v18 }
   0x9   :  { %174 = vmatprep.subr.mxu0 %v196_v6 }
   0xa   :  { %175 = vmatpush3.msra.mxu0 %v72_v8 }
   0xb   :  { %191 = vset.pattern.permute.xlu0 %v195_v4  ;;  %176 = vmatprep.subr.mxu0 %v196_v6 }
   0xc   :  { %177 = vmatpush3.msra.mxu0 %v71_v9 }
  0x7d   :  { %v25_v15 = vpop.permute.xlu0 %24  ;;  %v44_v17 = vpop.permute.xlu1 %43 }
  0x7e   :  { %v31_v25 = vmul.f32 %v30_v19, %v25_v15  ;;  %v50_v27 = vmul.f32 %v49_v21, %v44_v17 }
  0x82   :  { %v34_v23 = vpop.permute.xlu0 %33  ;;  %v54_v24 = vpop.permute.xlu1 %53 }
  0x83   :  { %v40_v26 = vmul.f32 %v39_v20, %v34_v23  ;;  %v60_v29 = vmul.f32 %v59_v22, %v54_v24 }
  0x85   :  { %v41_v28 = vadd.f32 %v40_v26, %v31_v25 }
  0x87   :  { %v51_v30 = vadd.f32 %v50_v27, %v41_v28 }
  0x89   :  { %v61_v32 = vadd.f32 %v60_v29, %v51_v30 }
  0x8b   :  { %v69_v33 = vadd.f32 %v162_v31, %v61_v32 }
  0x8d   :  { %v70_v34 = vmax.f32 %v69_v33, 0.0 }
  0x8f   :  { %179 = vmatmul.mubr.msk.f32.vlgmr.msra.gmra.mxu0 %vm82_vm1, %v70_v34 }
 0x14f   :  { %v152_v36 = vpop.f32.mrf.mxu0 }
 0x150   :  { %v153_v37 = vadd.f32 %v163_v35, %v152_v36 }
 0x151   :  { %v180_v38 = vpop.f32.mrf.mxu0 }
 0x152   :  { %157 = vst.msk [vmem:[%s260_s5] sm:$0xff] %vm156_vm2, %v153_v37 }

</bundles_post_ra>
